<compile_context>
chip_gen: v5e
topology: v5e:2x2
jax: 0.10.0
libtpu: 0.0.40
codegen_flags: <defaults>
</compile_context>

<pallas_src>
import functools

import jax
import jax.numpy as jnp
from jax.experimental import pallas as pl
from jax.experimental.pallas import tpu as pltpu


def _round_up(x, m):
    return (x + m - 1) // m * m


def _pick_tile_m(bt, hp, vp, budget_bytes=8 * 1024 * 1024):
    """Row-tile size: keep live f32 (tm, Vp) intermediates + double-buffered
    bf16 inputs within a conservative budget (fits v7x's smaller VMEM)."""
    per_row = 3 * vp * 4 + 2 * hp * 2 + 8
    tm = budget_bytes // per_row
    tm = max(16, min(512, (tm // 16) * 16))       # multiple of 16 (bf16 packing)
    return min(tm, _round_up(bt, 16))


def _tacotron2_asr_loss_kernel(
    dec_ref,     # (TM, Hp) bf16 : ASR decoder hidden states (row tile)
    w_ref,       # (Hp, Vp) bf16 : output projection weight (resident)
    b_ref,       # (1, Vp)  f32  : output projection bias, -1e30 in pad lanes
    tgt_ref,     # (TM, 1)  i32  : target ids, -1 => masked / padded row
    tts_ref,     # (B, L)   f32  : stop-token logits (resident)
    flens_ref,   # (B, 1)   i32  : generated feature lengths (resident)
    out_ref,     # (1, 128) f32  : [loss, asr_loss, bce_loss, 0...]
    num_acc,     # (1, 1)   f32 scratch : sum(valid * (lse - tgt_logit))
    cnt_acc,     # (1, 1)   f32 scratch : sum(valid)
    bce_acc,     # (1, 1)   f32 scratch : bce loss (computed once)
    *,
    weight,
):
    i = pl.program_id(0)
    nsteps = pl.num_programs(0)

    # ----------------- init + stop-token BCE (once, at i == 0) -----------------
    @pl.when(i == 0)
    def _init():
        num_acc[...] = jnp.zeros_like(num_acc)
        cnt_acc[...] = jnp.zeros_like(cnt_acc)

        x = tts_ref[...]                                            # (B, L) f32
        Bz, Lz = x.shape
        frame_iota = jax.lax.broadcasted_iota(jnp.int32, (Bz, Lz), 1)
        # labels[b, t] = 1 iff t == flens[b]-1; fold -x*labels into a select-sum
        hot = frame_iota == (flens_ref[...] - 1)                    # (B, L) bool
        pointwise = jnp.maximum(x, 0.0) + jnp.log1p(jnp.exp(-jnp.abs(x)))
        hot_term = jnp.where(hot, x, 0.0)
        bce_acc[...] = jnp.sum(pointwise - hot_term, keepdims=True) / float(Bz * Lz)

    # ------------- ASR decoder cross-entropy contribution of this tile ---------
    # bf16 MXU matmul, f32 accumulation; padded vocab lanes get -1e30 bias so
    # they vanish from max / sum-exp without extra masking.
    logits = jnp.dot(dec_ref[...], w_ref[...],
                     preferred_element_type=jnp.float32) + b_ref[...]   # (TM, Vp)

    tgt = tgt_ref[...]                                              # (TM, 1) i32
    valid = (tgt >= 0).astype(jnp.float32)                          # (TM, 1)

    m = jnp.max(logits, axis=-1, keepdims=True)                     # (TM, 1)
    lse = jnp.log(jnp.sum(jnp.exp(logits - m), axis=-1, keepdims=True)) + m
    vocab_iota = jax.lax.broadcasted_iota(jnp.int32, logits.shape, 1)
    tgt_logit = jnp.sum(jnp.where(vocab_iota == tgt, logits, 0.0),
                        axis=-1, keepdims=True)                     # (TM, 1)

    num_acc[...] += jnp.sum(valid * (lse - tgt_logit), keepdims=True)
    cnt_acc[...] += jnp.sum(valid, keepdims=True)

    # ------------------------------ finalize -----------------------------------
    @pl.when(i == nsteps - 1)
    def _fin():
        n_valid = jnp.maximum(cnt_acc[...], 1.0)     # guard: all-masked => no NaN
        asr = num_acc[...] / n_valid                 # (1, 1)
        bce = bce_acc[...]                           # (1, 1)
        loss = (asr + bce) * weight                  # (1, 1)
        lane = jax.lax.broadcasted_iota(jnp.int32, out_ref.shape, 1)   # (1, 128)
        out_ref[...] = (jnp.where(lane == 0, loss, 0.0)
                        + jnp.where(lane == 1, asr, 0.0)
                        + jnp.where(lane == 2, bce, 0.0))


def tacotron2_asr_loss(dec_hidden, w_out, b_out, xs, ilens, tts_logits, flens,
                       weight=1.0):
    """dec_hidden: (B, T, H) f32, w_out: (H, V), b_out: (V,), xs: (B, T) i32,
    ilens/flens: (B,) i32, tts_logits: (B, L) f32.
    Returns (loss, asr_loss, bce_loss) scalars."""
    B, T, H = dec_hidden.shape
    V = w_out.shape[1]
    _, L = tts_logits.shape
    BT = B * T

    Hp = _round_up(H, 128)
    Vp = _round_up(V, 128)
    tm = _pick_tile_m(BT, Hp, Vp)
    BTp = _round_up(BT, tm)
    n_tiles = BTp // tm

    # --- glue / padding (layout plumbing, done once in XLA) ---
    dec2 = dec_hidden.reshape(BT, H).astype(jnp.float32)
    dec2 = jnp.pad(dec2, ((0, BTp - BT), (0, Hp - H))).astype(jnp.bfloat16)

    w = jnp.pad(w_out.astype(jnp.float32),
                ((0, Hp - H), (0, Vp - V))).astype(jnp.bfloat16)
    b = jnp.full((Vp,), -1e30, dtype=jnp.float32)
    b = b.at[:V].set(b_out.astype(jnp.float32).reshape(-1)).reshape(1, Vp)

    # targets with validity folded in: -1 => row masked (t >= ilens-1 or pad)
    t_idx = jnp.arange(T, dtype=jnp.int32)[None, :]
    valid = t_idx < (ilens.astype(jnp.int32)[:, None] - 1)          # (B, T)
    tgt = jnp.where(valid, xs.astype(jnp.int32), -1).reshape(BT, 1)
    tgt = jnp.pad(tgt, ((0, BTp - BT), (0, 0)), constant_values=-1)

    # clamp flens into [1, L] (PyTorch would raise on an OOB stop-token index)
    flens2 = jnp.clip(flens.astype(jnp.int32), 1, L).reshape(B, 1)
    tts = tts_logits.astype(jnp.float32)

    # weight is baked in at trace time (matches the module's fixed self.weight)
    kernel = functools.partial(_tacotron2_asr_loss_kernel, weight=float(weight))

    grid_spec = pltpu.PrefetchScalarGridSpec(
        num_scalar_prefetch=0,
        grid=(n_tiles,),
        in_specs=[
            pl.BlockSpec((tm, Hp), lambda i: (i, 0)),    # dec hidden row tile
            pl.BlockSpec((Hp, Vp), lambda i: (0, 0)),    # W (resident)
            pl.BlockSpec((1, Vp), lambda i: (0, 0)),     # bias (resident)
            pl.BlockSpec((tm, 1), lambda i: (i, 0)),     # targets row tile
            pl.BlockSpec((B, L), lambda i: (0, 0)),      # stop-token logits
            pl.BlockSpec((B, 1), lambda i: (0, 0)),      # flens
        ],
        out_specs=pl.BlockSpec((1, 128), lambda i: (0, 0)),
        scratch_shapes=[pltpu.VMEM((1, 1), jnp.float32)] * 3,
    )

    out = pl.pallas_call(
        kernel,
        out_shape=jax.ShapeDtypeStruct((1, 128), jnp.float32),
        grid_spec=grid_spec,
        compiler_params=pltpu.CompilerParams(
            # the row axis carries the CE accumulators -> reduction
            dimension_semantics=("arbitrary",),
            # raise v5e's 16 MiB default; stays within v7x's 64 MiB physical
            vmem_limit_bytes=32 * 1024 * 1024,
        ),
    )(dec2, w, b, tgt, tts, flens2)

    return out[0, 0], out[0, 1], out[0, 2]


if __name__ == "__main__":
    key = jax.random.PRNGKey(0)
    k1, k2, k3, k4, _ = jax.random.split(key, 5)

    B = 2      # batch
    T = 8      # Tmax (character sequence length)
    H = 32     # ASR decoder hidden dim
    V = 32     # vocab size (odim of ASR decoder)
    L = 16     # Lmax (generated feature frames)

    # synthetic stand-ins for the external sub-model outputs
    dec_hidden = jax.random.normal(k1, (B, T, H), dtype=jnp.float32)
    xs = jax.random.randint(k2, (B, T), 0, V, dtype=jnp.int32)
    ilens = jnp.array([8, 6], dtype=jnp.int32)
    tts_logits = jax.random.normal(k3, (B, L), dtype=jnp.float32)
    flens = jnp.array([16, 12], dtype=jnp.int32)

    # deterministic parameter init for the ASR decoder output projection
    w_out = 0.02 * jax.random.normal(k4, (H, V), dtype=jnp.float32)
    b_out = jnp.zeros((V,), dtype=jnp.float32)

    loss, asr_loss, bce_loss = tacotron2_asr_loss(
        dec_hidden, w_out, b_out, xs, ilens, tts_logits, flens, weight=1.0)
    jax.block_until_ready((loss, asr_loss, bce_loss))

    assert bool(jnp.isfinite(loss)), "non-finite loss"
    assert bool(jnp.isfinite(asr_loss)) and bool(jnp.isfinite(bce_loss))
    print("KERNEL_OK")
</pallas_src>

<mosaic_0001>
module attributes {stable_mosaic.version = 11 : i64} {
  func.func @_tacotron2_asr_loss_kernel(%arg0: i32, %arg1: memref<16x128xbf16, #tpu.memory_space<vmem>>, %arg2: memref<128x128xbf16, #tpu.memory_space<vmem>>, %arg3: memref<1x128xf32, #tpu.memory_space<vmem>>, %arg4: memref<16x1xi32, #tpu.memory_space<vmem>>, %arg5: memref<2x16xf32, #tpu.memory_space<vmem>>, %arg6: memref<2x1xi32, #tpu.memory_space<vmem>>, %arg7: memref<1x128xf32, #tpu.memory_space<vmem>>, %arg8: memref<1x1xf32, #tpu.memory_space<vmem>>, %arg9: memref<1x1xf32, #tpu.memory_space<vmem>>, %arg10: memref<1x1xf32, #tpu.memory_space<vmem>>) attributes {dimension_semantics = [#tpu.dimension_semantics<arbitrary>], iteration_bounds = array<i64: 1>, scalar_prefetch = 0 : i64, scratch_operands = 3 : i64, tpu.core_type = #tpu.core_type<tc>, window_params = [{transform_indices = @transform_0, window_bounds = array<i64: 16, 128>}, {pipeline_mode = #tpu.pipeline_mode<synchronous>, transform_indices = @transform_1, window_bounds = array<i64: 128, 128>}, {pipeline_mode = #tpu.pipeline_mode<synchronous>, transform_indices = @transform_2, window_bounds = array<i64: 1, 128>}, {transform_indices = @transform_3, window_bounds = array<i64: 16, 1>}, {pipeline_mode = #tpu.pipeline_mode<synchronous>, transform_indices = @transform_4, window_bounds = array<i64: 2, 16>}, {pipeline_mode = #tpu.pipeline_mode<synchronous>, transform_indices = @transform_5, window_bounds = array<i64: 2, 1>}, {pipeline_mode = #tpu.pipeline_mode<synchronous>, transform_indices = @transform_6, window_bounds = array<i64: 1, 128>}]} {
    %c0_i32 = arith.constant 0 : i32
    %0 = arith.cmpi eq, %arg0, %c0_i32 : i32
    %1 = arith.extui %0 : i1 to i32
    %c0_i32_0 = arith.constant 0 : i32
    %2 = arith.cmpi ne, %1, %c0_i32_0 : i32
    scf.if %2 {
      %cst_25 = arith.constant 0.000000e+00 : f32
      %51 = vector.broadcast %cst_25 : f32 to vector<1x1xf32>
      %c0_26 = arith.constant 0 : index
      %c0_27 = arith.constant 0 : index
      %52 = vector.load %arg8[%c0_26, %c0_27] : memref<1x1xf32, #tpu.memory_space<vmem>>, vector<1x1xf32>
      tpu.vector_store %arg8[%c0_26, %c0_27], %51 {strides = array<i32>} : memref<1x1xf32, #tpu.memory_space<vmem>>, vector<1x1xf32>,
      %cst_28 = arith.constant 0.000000e+00 : f32
      %53 = vector.broadcast %cst_28 : f32 to vector<1x1xf32>
      %c0_29 = arith.constant 0 : index
      %c0_30 = arith.constant 0 : index
      %54 = vector.load %arg9[%c0_29, %c0_30] : memref<1x1xf32, #tpu.memory_space<vmem>>, vector<1x1xf32>
      tpu.vector_store %arg9[%c0_29, %c0_30], %53 {strides = array<i32>} : memref<1x1xf32, #tpu.memory_space<vmem>>, vector<1x1xf32>,
      %c0_31 = arith.constant 0 : index
      %c0_32 = arith.constant 0 : index
      %55 = vector.load %arg5[%c0_31, %c0_32] : memref<2x16xf32, #tpu.memory_space<vmem>>, vector<2x16xf32>
      %56 = tpu.iota {dimensions = array<i32: 1>} : vector<2x16xi32>
      %c0_33 = arith.constant 0 : index
      %c0_34 = arith.constant 0 : index
      %57 = vector.load %arg6[%c0_33, %c0_34] : memref<2x1xi32, #tpu.memory_space<vmem>>, vector<2x1xi32>
      %c1_i32 = arith.constant 1 : i32
      %58 = vector.broadcast %c1_i32 : i32 to vector<2x1xi32>
      %59 = arith.subi %57, %58 : vector<2x1xi32>
      %60 = vector.broadcast %59 : vector<2x1xi32> to vector<2x16xi32>
      %61 = arith.cmpi eq, %56, %60 : vector<2x16xi32>
      %cst_35 = arith.constant 0.000000e+00 : f32
      %62 = vector.broadcast %cst_35 : f32 to vector<2x16xf32>
      %63 = arith.maximumf %55, %62 : vector<2x16xf32>
      %64 = math.absf %55 : vector<2x16xf32>
      %cst_36 = arith.constant 0.000000e+00 : f32
      %65 = vector.broadcast %cst_36 : f32 to vector<2x16xf32>
      %66 = arith.subf %65, %64 : vector<2x16xf32>
      %67 = math.exp %66 : vector<2x16xf32>
      %68 = math.log1p %67 : vector<2x16xf32>
      %69 = arith.addf %63, %68 : vector<2x16xf32>
      %cst_37 = arith.constant 0.000000e+00 : f32
      %70 = vector.broadcast %cst_37 : f32 to vector<2x16xf32>
      %71 = arith.select %61, %55, %70 : vector<2x16xi1>, vector<2x16xf32>
      %72 = arith.subf %69, %71 : vector<2x16xf32>
      %73 = vector.shape_cast %72 : vector<2x16xf32> to vector<1x2x16xf32>
      %cst_38 = arith.constant dense<0.000000e+00> : vector<1xf32>
      %74 = vector.multi_reduction <add>, %73, %cst_38 [1, 2] : vector<1x2x16xf32> to vector<1xf32>
      %75 = vector.shape_cast %74 : vector<1xf32> to vector<1x1x1xf32>
      %76 = vector.extract %75[0, 0, 0] : f32 from vector<1x1x1xf32>
      %77 = vector.broadcast %76 : f32 to vector<1x1xf32>
      %cst_39 = arith.constant 3.200000e+01 : f32
      %78 = vector.broadcast %cst_39 : f32 to vector<1x1xf32>
      %79 = arith.divf %77, %78 : vector<1x1xf32>
      %c0_40 = arith.constant 0 : index
      %c0_41 = arith.constant 0 : index
      %80 = vector.load %arg10[%c0_40, %c0_41] : memref<1x1xf32, #tpu.memory_space<vmem>>, vector<1x1xf32>
      tpu.vector_store %arg10[%c0_40, %c0_41], %79 {strides = array<i32>} : memref<1x1xf32, #tpu.memory_space<vmem>>, vector<1x1xf32>,
    } else {
    }
    %c0 = arith.constant 0 : index
    %c0_1 = arith.constant 0 : index
    %3 = vector.load %arg1[%c0, %c0_1] : memref<16x128xbf16, #tpu.memory_space<vmem>>, vector<16x128xbf16>
    %c0_2 = arith.constant 0 : index
    %c0_3 = arith.constant 0 : index
    %4 = vector.load %arg2[%c0_2, %c0_3] : memref<128x128xbf16, #tpu.memory_space<vmem>>, vector<128x128xbf16>
    %cst = arith.constant dense<0.000000e+00> : vector<16x128xf32>
    %5 = tpu.matmul %3, %4, %cst {dimension_numbers = #tpu.dot_dimension_numbers<[1], [0], [0], [1], [0, 0, 1, 1], [], []>} : vector<16x128xbf16>, vector<128x128xbf16>, vector<16x128xf32> -> vector<16x128xf32>
    %c0_4 = arith.constant 0 : index
    %c0_5 = arith.constant 0 : index
    %6 = vector.load %arg3[%c0_4, %c0_5] : memref<1x128xf32, #tpu.memory_space<vmem>>, vector<1x128xf32>
    %7 = vector.broadcast %6 : vector<1x128xf32> to vector<16x128xf32>
    %8 = arith.addf %5, %7 : vector<16x128xf32>
    %c0_6 = arith.constant 0 : index
    %c0_7 = arith.constant 0 : index
    %9 = vector.load %arg4[%c0_6, %c0_7] : memref<16x1xi32, #tpu.memory_space<vmem>>, vector<16x1xi32>
    %c0_i32_8 = arith.constant 0 : i32
    %10 = vector.broadcast %c0_i32_8 : i32 to vector<16x1xi32>
    %11 = arith.cmpi sge, %9, %10 : vector<16x1xi32>
    %12 = arith.extui %11 : vector<16x1xi1> to vector<16x1xi32>
    %13 = arith.sitofp %12 : vector<16x1xi32> to vector<16x1xf32>
    %cst_9 = arith.constant dense<0xFF800000> : vector<16xf32>
    %14 = vector.multi_reduction <maximumf>, %8, %cst_9 [1] : vector<16x128xf32> to vector<16xf32>
    %15 = vector.shape_cast %14 : vector<16xf32> to vector<16x1xf32>
    %16 = vector.broadcast %15 : vector<16x1xf32> to vector<16x128xf32>
    %17 = arith.subf %8, %16 : vector<16x128xf32>
    %18 = math.exp %17 : vector<16x128xf32>
    %cst_10 = arith.constant dense<0.000000e+00> : vector<16xf32>
    %19 = vector.multi_reduction <add>, %18, %cst_10 [1] : vector<16x128xf32> to vector<16xf32>
    %20 = vector.shape_cast %19 : vector<16xf32> to vector<16x1xf32>
    %21 = math.log %20 : vector<16x1xf32>
    %22 = arith.addf %21, %15 : vector<16x1xf32>
    %23 = tpu.iota {dimensions = array<i32: 1>} : vector<16x128xi32>
    %24 = vector.broadcast %9 : vector<16x1xi32> to vector<16x128xi32>
    %25 = arith.cmpi eq, %23, %24 : vector<16x128xi32>
    %cst_11 = arith.constant 0.000000e+00 : f32
    %26 = vector.broadcast %cst_11 : f32 to vector<16x128xf32>
    %27 = arith.select %25, %8, %26 : vector<16x128xi1>, vector<16x128xf32>
    %cst_12 = arith.constant dense<0.000000e+00> : vector<16xf32>
    %28 = vector.multi_reduction <add>, %27, %cst_12 [1] : vector<16x128xf32> to vector<16xf32>
    %29 = vector.shape_cast %28 : vector<16xf32> to vector<16x1xf32>
    %c0_13 = arith.constant 0 : index
    %c0_14 = arith.constant 0 : index
    %30 = vector.load %arg8[%c0_13, %c0_14] : memref<1x1xf32, #tpu.memory_space<vmem>>, vector<1x1xf32>
    %31 = arith.subf %22, %29 : vector<16x1xf32>
    %32 = arith.mulf %13, %31 : vector<16x1xf32>
    %33 = vector.shape_cast %32 : vector<16x1xf32> to vector<1x16x1xf32>
    %cst_15 = arith.constant dense<0.000000e+00> : vector<1xf32>
    %34 = vector.multi_reduction <add>, %33, %cst_15 [1, 2] : vector<1x16x1xf32> to vector<1xf32>
    %35 = vector.shape_cast %34 : vector<1xf32> to vector<1x1x1xf32>
    %36 = vector.extract %35[0, 0, 0] : f32 from vector<1x1x1xf32>
    %37 = vector.broadcast %36 : f32 to vector<1x1xf32>
    %38 = arith.addf %30, %37 : vector<1x1xf32>
    %c0_16 = arith.constant 0 : index
    %c0_17 = arith.constant 0 : index
    %39 = vector.load %arg8[%c0_16, %c0_17] : memref<1x1xf32, #tpu.memory_space<vmem>>, vector<1x1xf32>
    tpu.vector_store %arg8[%c0_16, %c0_17], %38 {strides = array<i32>} : memref<1x1xf32, #tpu.memory_space<vmem>>, vector<1x1xf32>,
    %c0_18 = arith.constant 0 : index
    %c0_19 = arith.constant 0 : index
    %40 = vector.load %arg9[%c0_18, %c0_19] : memref<1x1xf32, #tpu.memory_space<vmem>>, vector<1x1xf32>
    %41 = vector.shape_cast %13 : vector<16x1xf32> to vector<1x16x1xf32>
    %cst_20 = arith.constant dense<0.000000e+00> : vector<1xf32>
    %42 = vector.multi_reduction <add>, %41, %cst_20 [1, 2] : vector<1x16x1xf32> to vector<1xf32>
    %43 = vector.shape_cast %42 : vector<1xf32> to vector<1x1x1xf32>
    %44 = vector.extract %43[0, 0, 0] : f32 from vector<1x1x1xf32>
    %45 = vector.broadcast %44 : f32 to vector<1x1xf32>
    %46 = arith.addf %40, %45 : vector<1x1xf32>
    %c0_21 = arith.constant 0 : index
    %c0_22 = arith.constant 0 : index
    %47 = vector.load %arg9[%c0_21, %c0_22] : memref<1x1xf32, #tpu.memory_space<vmem>>, vector<1x1xf32>
    tpu.vector_store %arg9[%c0_21, %c0_22], %46 {strides = array<i32>} : memref<1x1xf32, #tpu.memory_space<vmem>>, vector<1x1xf32>,
    %c0_i32_23 = arith.constant 0 : i32
    %48 = arith.cmpi eq, %arg0, %c0_i32_23 : i32
    %49 = arith.extui %48 : i1 to i32
    %c0_i32_24 = arith.constant 0 : i32
    %50 = arith.cmpi ne, %49, %c0_i32_24 : i32
    scf.if %50 {
      %c0_25 = arith.constant 0 : index
      %c0_26 = arith.constant 0 : index
      %51 = vector.load %arg9[%c0_25, %c0_26] : memref<1x1xf32, #tpu.memory_space<vmem>>, vector<1x1xf32>
      %cst_27 = arith.constant 1.000000e+00 : f32
      %52 = vector.broadcast %cst_27 : f32 to vector<1x1xf32>
      %53 = arith.maximumf %51, %52 : vector<1x1xf32>
      %c0_28 = arith.constant 0 : index
      %c0_29 = arith.constant 0 : index
      %54 = vector.load %arg8[%c0_28, %c0_29] : memref<1x1xf32, #tpu.memory_space<vmem>>, vector<1x1xf32>
      %55 = arith.divf %54, %53 : vector<1x1xf32>
      %c0_30 = arith.constant 0 : index
      %c0_31 = arith.constant 0 : index
      %56 = vector.load %arg10[%c0_30, %c0_31] : memref<1x1xf32, #tpu.memory_space<vmem>>, vector<1x1xf32>
      %57 = arith.addf %55, %56 : vector<1x1xf32>
      %cst_32 = arith.constant 1.000000e+00 : f32
      %58 = vector.broadcast %cst_32 : f32 to vector<1x1xf32>
      %59 = arith.mulf %57, %58 : vector<1x1xf32>
      %60 = tpu.iota {dimensions = array<i32: 1>} : vector<1x128xi32>
      %c0_i32_33 = arith.constant 0 : i32
      %61 = vector.broadcast %c0_i32_33 : i32 to vector<1x128xi32>
      %62 = arith.cmpi eq, %60, %61 : vector<1x128xi32>
      %cst_34 = arith.constant 0.000000e+00 : f32
      %63 = vector.shape_cast %59 : vector<1x1xf32> to vector<1x1xf32>
      %64 = vector.broadcast %63 : vector<1x1xf32> to vector<1x128xf32>
      %65 = vector.broadcast %cst_34 : f32 to vector<1x128xf32>
      %66 = arith.select %62, %64, %65 : vector<1x128xi1>, vector<1x128xf32>
      %c1_i32 = arith.constant 1 : i32
      %67 = vector.broadcast %c1_i32 : i32 to vector<1x128xi32>
      %68 = arith.cmpi eq, %60, %67 : vector<1x128xi32>
      %cst_35 = arith.constant 0.000000e+00 : f32
      %69 = vector.shape_cast %55 : vector<1x1xf32> to vector<1x1xf32>
      %70 = vector.broadcast %69 : vector<1x1xf32> to vector<1x128xf32>
      %71 = vector.broadcast %cst_35 : f32 to vector<1x128xf32>
      %72 = arith.select %68, %70, %71 : vector<1x128xi1>, vector<1x128xf32>
      %73 = arith.addf %66, %72 : vector<1x128xf32>
      %c2_i32 = arith.constant 2 : i32
      %74 = vector.broadcast %c2_i32 : i32 to vector<1x128xi32>
      %75 = arith.cmpi eq, %60, %74 : vector<1x128xi32>
      %cst_36 = arith.constant 0.000000e+00 : f32
      %76 = vector.shape_cast %56 : vector<1x1xf32> to vector<1x1xf32>
      %77 = vector.broadcast %76 : vector<1x1xf32> to vector<1x128xf32>
      %78 = vector.broadcast %cst_36 : f32 to vector<1x128xf32>
      %79 = arith.select %75, %77, %78 : vector<1x128xi1>, vector<1x128xf32>
      %80 = arith.addf %73, %79 : vector<1x128xf32>
      %c0_37 = arith.constant 0 : index
      %c0_38 = arith.constant 0 : index
      %81 = vector.load %arg7[%c0_37, %c0_38] : memref<1x128xf32, #tpu.memory_space<vmem>>, vector<1x128xf32>
      tpu.vector_store %arg7[%c0_37, %c0_38], %80 {strides = array<i32>} : memref<1x128xf32, #tpu.memory_space<vmem>>, vector<1x128xf32>,
    } else {
    }
    return
  }
  func.func @transform_0(%arg0: i32) -> (i32, i32) {
    %c0_i32 = arith.constant 0 : i32
    %c0_i32_0 = arith.constant 0 : i32
    return %arg0, %c0_i32 : i32, i32
  }
  func.func @transform_1(%arg0: i32) -> (i32, i32) {
    %c0_i32 = arith.constant 0 : i32
    %c0_i32_0 = arith.constant 0 : i32
    %c0_i32_1 = arith.constant 0 : i32
    return %c0_i32, %c0_i32_0 : i32, i32
  }
  func.func @transform_2(%arg0: i32) -> (i32, i32) {
    %c0_i32 = arith.constant 0 : i32
    %c0_i32_0 = arith.constant 0 : i32
    %c0_i32_1 = arith.constant 0 : i32
    return %c0_i32, %c0_i32_0 : i32, i32
  }
  func.func @transform_3(%arg0: i32) -> (i32, i32) {
    %c0_i32 = arith.constant 0 : i32
    %c0_i32_0 = arith.constant 0 : i32
    return %arg0, %c0_i32 : i32, i32
  }
  func.func @transform_4(%arg0: i32) -> (i32, i32) {
    %c0_i32 = arith.constant 0 : i32
    %c0_i32_0 = arith.constant 0 : i32
    %c0_i32_1 = arith.constant 0 : i32
    return %c0_i32, %c0_i32_0 : i32, i32
  }
  func.func @transform_5(%arg0: i32) -> (i32, i32) {
    %c0_i32 = arith.constant 0 : i32
    %c0_i32_0 = arith.constant 0 : i32
    %c0_i32_1 = arith.constant 0 : i32
    return %c0_i32, %c0_i32_0 : i32, i32
  }
  func.func @transform_6(%arg0: i32) -> (i32, i32) {
    %c0_i32 = arith.constant 0 : i32
    %c0_i32_0 = arith.constant 0 : i32
    %c0_i32_1 = arith.constant 0 : i32
    return %c0_i32, %c0_i32_0 : i32, i32
  }
}

</mosaic_0001>

<bundles_post_ra>
// kernel: tpu_custom_call.1
= control target key start
LH: loop header
LB: loop body
LE: loop exit
PB: predicated region body
PF: predicated region fallthrough
CT: control target
= control target key end

     0   :  { %11 = vsyncpa [#allocation6], 0  ;;  %s557_s0 = inlined_call_operand.vmem [shape: bf16[16,128], index: 0, kind: input, shape index: {}]   ;;  %s558_s1 = inlined_call_operand.hbm [shape: bf16[128,128], index: 1, kind: input, shape index: {}]   ;;  %s559_s2 = inlined_call_operand.vmem [shape: f32[1,128], index: 2, kind: input, shape index: {}]   ;;  %s560_s3 = inlined_call_operand.vmem [shape: s32[16,1], index: 3, kind: input, shape index: {}]   ;;  %s561_s4 = inlined_call_operand.vmem [shape: f32[2,16], index: 4, kind: input, shape index: {}]   ;;  %s562_s5 = inlined_call_operand.vmem [shape: s32[2,1], index: 5, kind: input, shape index: {}]   ;;  %s563_s6 = inlined_call_operand.hbm [shape: f32[1,128], index: 6, kind: output, shape index: {}]  }
   0x1   :  { %12 = vsyncpa [#allocation7], 0  ;;  %s19_s23 = sshll.u32 %s558_s1, 4  ;;  %s466_s24 = smov [#allocation5]   ;;  %s20_s23 = int_to_ptr.hbm [resolvable:$true] %s19_s23 }
   0x2   :  { %s21_s25 = sshll.u32 %s466_s24, 4  ;;  %s467_s26 = smov 64   ;;  %s22_s25 = int_to_ptr.vmem [resolvable:$true] %s21_s25 }
   0x3   :  { %s468_s27 = smov 4  }
   0x4   :  { %27 = dma.hbm_to_vmem [thread:$0]  %s20_s23, 1024, %s22_s25, [#allocation6], %s467_s26, %s467_s26, %s468_s27  }
   0x5   :  { %462 = dma.done.wait [#allocation6], 1024  }
   0x6   :  { %463 = vsyncadd [#allocation6], 4294966272  ;;  %v380_v0 = vld [vmem:[#allocation5 + $0x38] sm:$0xff]  ;;  %vm44_vm0 = vcmask 0   ;;  %v379_v1 = vld [vmem:[#allocation5 + $0x30] sm:$0xff]  ;;  %v469_v2 = vmov 0   ;;  %v48_v19 = vlaneseq }
   0x7   :  { %170 = vmatpush.bf16.msra.mxu0 %v380_v0  ;;  %394 = vset.pattern.permute.xlu1 %v469_v2  ;;  %v470_v3 = vmov 0.0   ;;  %v184_v4 = vld [vmem:[%s560_s3] sm:$0xff]  ;;  %v185_v5 = vld [vmem:[%s560_s3 + $0x8] sm:$0xff]  ;;  %v375_v11 = vld [vmem:[#allocation5 + $0x10] sm:$0xff]  ;;  %vm233_vm5 = vcmask 7168   ;;  %vm73_vm8 = vcmask 123904  }
   0x8   :  { %45 = vst.msk [vmem:[#allocation2] sm:$0x1] %vm44_vm0, %v470_v3  ;;  %395 = vset.pattern.permute.xlu2 %v469_v2  ;;  %396 = vset.pattern.permute.xlu0 %v469_v2  ;;  %vm186_vm1 = vcmp.ge.s32.totalorder %v184_v4, 0  ;;  %vm187_vm2 = vcmp.ge.s32.totalorder %v185_v5, 0  ;;  %v378_v8 = vld [vmem:[#allocation5 + $0x28] sm:$0xff]  ;;  %v377_v9 = vld [vmem:[#allocation5 + $0x20] sm:$0xff] }
   0x9   :  { %46 = vst.msk [vmem:[#allocation3] sm:$0x1] %vm44_vm0, %v470_v3  ;;  %215 = vperm.xlu1 %394, %v184_v4   ;;  %v519_v6 = vsel %vm186_vm1, 1.0, %v470_v3  ;;  %v521_v7 = vsel %vm187_vm2, 1.0, %v470_v3  ;;  %v376_v10 = vld [vmem:[#allocation5 + $0x18] sm:$0xff]  ;;  %v374_v12 = vld [vmem:[#allocation5 + $0x8] sm:$0xff] }
   0xa   :  { %v373_v13 = vld [vmem:[#allocation5] sm:$0xff]  ;;  %v397_v16 = vld [vmem:[%s559_s2] ss:$0 sm:$0xff]  ;;  %v529_v21 = vand.u32 127, %v48_v19  ;;  %v251_v42 = vsel %vm233_vm5, %v519_v6, 0.0  ;;  %v252_v43 = vsel %vm233_vm5, %v521_v7, 0.0 }
   0xb   :  { %171 = vmatpush.bf16.msra.mxu0 %v379_v1  ;;  %v372_v14 = vld [vmem:[%s557_s0] sm:$0xff]  ;;  %v253_v44 = vadd.f32 %v252_v43, %v251_v42  ;;  %s472_s13 = smov [#allocation8]   ;;  %s323_s17 = sshll.u32 %s563_s6, 4  ;;  %s324_s17 = int_to_ptr.hbm [resolvable:$true] %s323_s17 }
   0xc   :  { %v50_v34 = vld [vmem:[%s562_s5] sm:$0x3]  ;;  %vm289_vm14 = vcmp.eq.s32.totalorder %v529_v21, 0  ;;  %vm297_vm15 = vcmp.eq.s32.totalorder %v529_v21, 1  ;;  %s321_s14 = sshll.u32 %s472_s13, 4  ;;  %s322_s14 = int_to_ptr.vmem [resolvable:$true] %s321_s14 }
   0xd   :  { %v333_v35 = vadd.s32 4294967295, %v50_v34  ;;  %v47_v36 = vld [vmem:[%s561_s4] sm:$0x3] }
   0xe   :  { %v57_v37 = vand.u32 2147483647, %v47_v36  ;;  %v56_v55 = vmax.f32 %v47_v36, 0.0 }
   0xf   :  { %172 = vmatpush.bf16.msra.mxu0 %v378_v8  ;;  %v228_v42 = vld [vmem:[#allocation2] sm:$0x1] }
  0x10   :  { %v58_v38 = vsub.f32 0.0, %v57_v37 }
  0x11   :  { %218 = vperm.xlu1 %394, %v185_v5  }
  0x12   :  { %v59_v39 = vmul.f32 1.442695, %v58_v38 }
  0x13   :  { %173 = vmatpush.bf16.msra.mxu0 %v377_v9 }
  0x17   :  { %174 = vmatpush.bf16.msra.mxu0 %v376_v10 }
  0x1b   :  { %175 = vmatpush.bf16.msra.mxu0 %v375_v11 }
  0x1f   :  { %176 = vmatpush.bf16.msra.mxu0 %v374_v12 }
  0x23   :  { %177 = vmatpush.bf16.msra.mxu0 %v373_v13 }
  0x26   :  { %178 = vmatmul.bf16.vlgmr.msra.gmra.mxu0 %v372_v14 }
  0x7b   :  { %v216_v15 = vpop.permute.xlu1 %215 }
  0x7c   :  { %vm220_vm4 = vcmp.eq.s32.totalorder %v529_v21, %v216_v15 }
  0x83   :  { %v219_v20 = vpop.permute.xlu1 %218 }
  0x84   :  { %vm221_vm3 = vcmp.eq.s32.totalorder %v529_v21, %v219_v20 }
  0xa3   :  { %v179_v17 = vpop.f32.mrf.mxu0 }
  0xa4   :  { %v180_v18 = vadd.f32 %v397_v16, %v179_v17 }
  0xa6   :  { %192 = vmax.xlane.f32.xlu0 %v180_v18  ;;  %v222_v25 = vsel %vm220_vm4, %v180_v18, 0.0 }
  0xab   :  { %v181_v22 = vpop.f32.mrf.mxu0 }
  0xac   :  { %v182_v23 = vadd.f32 %v397_v16, %v181_v22 }
  0xae   :  { %194 = vmax.xlane.f32.xlu0 %v182_v23  ;;  %v223_v24 = vsel %vm221_vm3, %v182_v23, 0.0 }
  0xaf   :  { %226 = vadd.xlane.f32.xlu1 %v223_v24 }
  0xb6   :  { %224 = vadd.xlane.f32.xlu0 %v222_v25 }
 0x119   :  { %v193_v26 = vpop.xlane.xlu0 %192 }
 0x11a   :  { %v196_v27 = vsub.f32 %v180_v18, %v193_v26 }
 0x11c   :  { %v198_v28 = vmul.f32 1.442695, %v196_v27 }
 0x11e   :  { %398 = vpow2.f32 %v198_v28 }
 0x121   :  { %v195_v29 = vpop.xlane.xlu0 %194 }
 0x122   :  { %v197_v30 = vsub.f32 %v182_v23, %v195_v29  ;;  %v227_v2 = vpop.xlane.xlu1 %226 }
 0x124   :  { %v399_v31 = vpop.eup %398  ;;  %v200_v32 = vmul.f32 1.442695, %v197_v30 }
 0x125   :  { %202 = vadd.xlane.f32.xlu2 %v399_v31 }
 0x126   :  { %400 = vpow2.f32 %v200_v32 }
 0x127   :  { %402 = vpow2.f32 %v59_v39 }
 0x129   :  { %v225_v59 = vpop.xlane.xlu0 %224 }
 0x12c   :  { %v401_v33 = vpop.eup %400 }
 0x12d   :  { %204 = vadd.xlane.f32.xlu2 %v401_v33  ;;  %v403_v40 = vpop.eup %402  ;;  %v471_v33 = vmov 32.0  }
 0x12e   :  { %v61_v41 = vadd.f32 1.0, %v403_v40  ;;  %v64_v46 = vmul.f32 -0.5, %v403_v40  ;;  %v67_v49 = vand.u32 2147483647, %v403_v40 }
 0x130   :  { %404 = vlog2.f32 %v61_v41  ;;  %v65_v47 = vadd.f32 1.0, %v64_v46  ;;  %vm68_vm6 = vcmp.lt.f32.partialorder %v67_v49, 0.0004427343 }
 0x132   :  { %v66_v54 = vmul.f32 %v403_v40, %v65_v47 }
 0x136   :  { %v405_v48 = vpop.eup %404 }
 0x137   :  { %v63_v53 = vmul.f32 0.6931472, %v405_v48 }
 0x139   :  { %v69_v57 = vsel %vm68_vm6, %v66_v54, %v63_v53 }
 0x13a   :  { %v70_v60 = vadd.f32 %v69_v57, %v56_v55 }
 0x145   :  { %53 = vperm.xlu2 %395, %v333_v35  }
 0x198   :  { %v203_v45 = vpop.xlane.xlu2 %202 }
 0x199   :  { %406 = vlog2.f32 %v203_v45  ;;  %v250_v45 = vld [vmem:[#allocation3] sm:$0x1] }
 0x19f   :  { %v407_v50 = vpop.eup %406 }
 0x1a0   :  { %v207_v51 = vmul.f32 0.6931472, %v407_v50  ;;  %v205_v52 = vpop.xlane.xlu2 %204 }
 0x1a1   :  { %408 = vlog2.f32 %v205_v52 }
 0x1a2   :  { %v210_v56 = vadd.f32 %v207_v51, %v193_v26  ;;  %410 = vrcp.f32 %v471_v33 }
 0x1a4   :  { %v229_v61 = vsub.f32 %v210_v56, %v225_v59 }
 0x1a6   :  { %v231_v5 = vmul.f32 %v519_v6, %v229_v61 }
 0x1a7   :  { %v409_v58 = vpop.eup %408 }
 0x1a8   :  { %v209_v62 = vmul.f32 0.6931472, %v409_v58  ;;  %v54_v63 = vpop.permute.xlu2 %53  ;;  %v234_v10 = vsel %vm233_vm5, %v231_v5, 0.0  ;;  %v411_v34 = vpop.eup %410 }
 0x1a9   :  { %vm55_vm7 = vcmp.eq.s32.totalorder %v529_v21, %v54_v63  ;;  %v86_v35 = vmul.f32 32.0, %v411_v34  ;;  %vm90_vm9 = vweird.f32 %v411_v34 }
 0x1aa   :  { %v211_v0 = vadd.f32 %v209_v62, %v195_v29  ;;  %v71_v1 = vsel %vm55_vm7, %v47_v36, 0.0 }
 0x1ab   :  { %v72_v3 = vsub.f32 %v70_v60, %v71_v1  ;;  %v87_v36 = vsub.f32 1.0, %v86_v35 }
 0x1ac   :  { %v230_v4 = vsub.f32 %v211_v0, %v227_v2 }
 0x1ad   :  { %v74_v8 = vsel %vm73_vm8, %v72_v3, 0.0  ;;  %v88_v37 = vmul.f32 %v411_v34, %v87_v36 }
 0x1ae   :  { %75 = vadd.xlane.f32.xlu0 %v74_v8  ;;  %v232_v9 = vmul.f32 %v521_v7, %v230_v4 }
 0x1af   :  { %v89_v38 = vadd.f32 %v411_v34, %v88_v37 }
 0x1b0   :  { %v235_v11 = vsel %vm233_vm5, %v232_v9, 0.0 }
 0x1b1   :  { %v236_v12 = vadd.f32 %v235_v11, %v234_v10  ;;  %v91_v39 = vsel %vm90_vm9, %v411_v34, %v89_v38 }
 0x1b6   :  { %237 = vadd.xlane.f32.xlu0 %v236_v12 }
 0x1be   :  { %254 = vadd.xlane.f32.xlu0 %v253_v44 }
 0x221   :  { %v76_v13 = vpop.xlane.xlu0 %75 }
 0x222   :  { %v77_v14 = vrot.slane %v76_v13, 4 }
 0x224   :  { %v78_v15 = vadd.f32 %v77_v14, %v76_v13 }
 0x226   :  { %v79_v16 = vrot.slane %v78_v15, 2 }
 0x228   :  { %v80_v17 = vadd.f32 %v79_v16, %v78_v15 }
 0x229   :  { %v238_v18 = vpop.xlane.xlu0 %237 }
 0x22a   :  { %v239_v19 = vrot.slane %v238_v18, 4  ;;  %v81_v20 = vrot.slane %v80_v17, 1 }
 0x22c   :  { %v240_v6 = vadd.f32 %v239_v19, %v238_v18  ;;  %v82_v22 = vadd.f32 %v81_v20, %v80_v17 }
 0x22e   :  { %v241_v23 = vrot.slane %v240_v6, 2  ;;  %381 = vpush %v82_v22 }
 0x230   :  { %v242_v7 = vadd.f32 %v241_v23, %v240_v6 }
 0x231   :  { %v255_v24 = vpop.xlane.xlu0 %254 }
 0x232   :  { %v256_v25 = vrot.slane %v255_v24, 4  ;;  %v243_v26 = vrot.slane %v242_v7, 1 }
 0x234   :  { %v257_v27 = vadd.f32 %v256_v25, %v255_v24  ;;  %v244_v28 = vadd.f32 %v243_v26, %v242_v7 }
 0x236   :  { %v258_v29 = vrot.slane %v257_v27, 2  ;;  %383 = vpush %v244_v28 }
 0x238   :  { %v259_v30 = vadd.f32 %v258_v29, %v257_v27 }
 0x23a   :  { %v260_v31 = vrot.slane %v259_v30, 1 }
 0x23c   :  { %v261_v32 = vadd.f32 %v260_v31, %v259_v30 }
 0x23e   :  { %385 = vpush %v261_v32 }
 0x25f   :  { %s382_s4 = spop %381 }
 0x260   :  { %v84_v40 = vstv %s382_s4 }
 0x261   :  { %v92_v41 = vmul.f32 %v91_v39, %v84_v40 }
 0x263   :  { %93 = vst.msk [vmem:[#allocation4] sm:$0x1] %vm44_vm0, %v92_v41 }
 0x267   :  { %s384_s5 = spop %383 }
 0x268   :  { %v246_v43 = vstv %s384_s5 }
 0x269   :  { %v247_v44 = vadd.f32 %v246_v43, %v228_v42 }
 0x26a   :  { %v287_v62 = vld [vmem:[#allocation4] sm:$0x1] }
 0x26b   :  { %249 = vst.msk [vmem:[#allocation2] sm:$0x1] %vm44_vm0, %v247_v44 }
 0x26f   :  { %s386_s12 = spop %385 }
 0x270   :  { %v263_v46 = vstv %s386_s12 }
 0x271   :  { %v264_v47 = vadd.f32 %v263_v46, %v250_v45 }
 0x272   :  { %v271_v59 = vld [vmem:[#allocation2] sm:$0x1] }
 0x273   :  { %265 = vst.msk [vmem:[#allocation3] sm:$0x1] %vm44_vm0, %v264_v47  ;;  %vm306_vm0 = vcmp.eq.s32.totalorder %v529_v21, 2 }
 0x27a   :  { %v269_v48 = vld [vmem:[#allocation3] sm:$0x1] }
 0x27b   :  { %v270_v49 = vmax.f32 %v269_v48, 1.0 }
 0x27d   :  { %412 = vrcp.f32 %v270_v49  ;;  %v283_v53 = vand.u32 2147483648, %v270_v49  ;;  %v281_v55 = vand.u32 2147483647, %v270_v49  ;;  %vm277_vm11 = vweird.f32 %v270_v49 }
 0x27f   :  { %v284_v57 = vor.u32 1.1754944e-38, %v283_v53  ;;  %vm282_vm13 = vcmp.eq.f32.partialorder %v281_v55, 8.507059e+37 }
 0x283   :  { %v413_v50 = vpop.eup %412 }
 0x284   :  { %v273_v51 = vmul.f32 %v413_v50, %v270_v49  ;;  %vm278_vm10 = vweird.f32 %v413_v50 }
 0x285   :  { %vm279_vm12 = vmor %vm277_vm11, %vm278_vm10 }
 0x286   :  { %v274_v52 = vsub.f32 1.0, %v273_v51 }
 0x288   :  { %v275_v54 = vmul.f32 %v413_v50, %v274_v52 }
 0x28a   :  { %v276_v56 = vadd.f32 %v413_v50, %v275_v54 }
 0x28c   :  { %v280_v58 = vsel %vm279_vm12, %v413_v50, %v276_v56 }
 0x28d   :  { %v285_v60 = vsel %vm282_vm13, %v284_v57, %v280_v58 }
 0x28e   :  { %v286_v61 = vmul.f32 %v285_v60, %v271_v59 }
 0x290   :  { %300 = vperm.xlu0 %396, %v286_v61   ;;  %v288_v63 = vadd.f32 %v287_v62, %v286_v61 }
 0x292   :  { %292 = vperm.xlu2 %395, %v288_v63  }
 0x29a   :  { %309 = vperm.xlu2 %395, %v287_v62  }
 0x2ec   :  { %v293_v0 = vpop.permute.xlu2 %292 }
 0x2ed   :  { %v295_v2 = vperm.slane %v293_v0, 0 }
 0x2ef   :  { %v296_v8 = vsel %vm289_vm14, %v295_v2, 0.0 }
 0x2f4   :  { %v310_v1 = vpop.permute.xlu2 %309 }
 0x2f5   :  { %v312_v4 = vperm.slane %v310_v1, 0 }
 0x2f7   :  { %v313_v11 = vsel %vm306_vm0, %v312_v4, 0.0 }
 0x302   :  { %v301_v3 = vpop.permute.xlu0 %300 }
 0x303   :  { %v303_v5 = vperm.slane %v301_v3, 0 }
 0x305   :  { %v304_v9 = vsel %vm297_vm15, %v303_v5, 0.0 }
 0x306   :  { %v305_v10 = vadd.f32 %v304_v9, %v296_v8 }
 0x308   :  { %v314_v12 = vadd.f32 %v313_v11, %v305_v10 }
 0x30a   :  { %315 = vst [vmem:[#allocation8] sm:$0x1] %v314_v12 }
 0x30b   :  { %326 = dma.vmem_to_hbm [thread:$0]  %s322_s14, 16, %s324_s17, [#allocation7]  }
 0x30c   :  { %464 = dma.done.wait [#allocation7], 16  }
 0x30d   :  { %465 = vsyncadd [#allocation7], 4294967280 }
 0x30e   :  { %331 = vsyncpa [#allocation6], 1 }
 0x30f   :  { %332 = vsyncpa [#allocation7], 1 }

</bundles_post_ra>
